<compile_context>
chip_gen: v6e
topology: v6e:2x2x1
jax: 0.10.0
libtpu: 0.0.40
codegen_flags: <defaults>
</compile_context>

<pallas_src>
import functools

import jax
import jax.numpy as jnp
from jax.experimental import pallas as pl
from jax.experimental.pallas import tpu as pltpu

N = 181      # angle bins (output feature size)
H = 64       # hidden dim (beamforming-vector half-size)
N_PAD = 256  # lane-padded feature size (multiple of 128)


def _deep_mpdr_kernel(s_ref, y_ref, phi3t_ref, w_ref, ab_ref, out_ref, *, n_valid):
    # s_ref    : (2, B, N_PAD) f32   -- [0] = real half, [1] = imag half, zero lane-padded
    # y_ref    : (2, B, H)     f32
    # phi3t_ref: (H, N_PAD)    bf16  -- phi3^T, zero lane-padded
    # w_ref    : (2, N_PAD, N_PAD) bf16 -- [0] = (phi1@phi2)^T, [1] = phi4^T * phi5 (zero-padded)
    # ab_ref   : (2,) SMEM f32       -- [alpha, beta]
    # out_ref  : (B, N_PAD)    f32   -- padded lanes hold junk; wrapper slices them off
    f32 = jnp.float32
    bf16 = jnp.bfloat16

    phi3t = phi3t_ref[...]
    a_t = w_ref[0]
    m = w_ref[1]
    alpha = ab_ref[0]
    beta = ab_ref[1]

    b, n_pad = out_ref.shape
    # Lane-validity mask: padded columns must be excluded from the global min/max.
    col = jax.lax.broadcasted_iota(jnp.int32, (b, n_pad), 1)
    valid = col < n_valid

    def process_half(s_h, y_h):
        # t_s = phi1 @ phi2 @ diag(s) @ phi3 @ y  ==  (s * (y @ phi3^T)) @ (phi1@phi2)^T
        v = jnp.dot(y_h.astype(bf16), phi3t, preferred_element_type=f32)     # (B, N_PAD)
        w = s_h * v
        t = jnp.dot(w.astype(bf16), a_t, preferred_element_type=f32)         # (B, N_PAD)
        # b_s = diag(phi4 @ diag(s) @ phi5)  ==  s @ (phi4^T * phi5)
        bs = jnp.dot(s_h.astype(bf16), m, preferred_element_type=f32)        # (B, N_PAD)
        o = t * bs
        # Global (whole-half) min/max normalization, padded lanes masked out.
        mn = jnp.min(jnp.where(valid, o, jnp.inf), keepdims=True)            # (1, 1)
        mx = jnp.max(jnp.where(valid, o, -jnp.inf), keepdims=True)           # (1, 1)
        inv = 1.0 / (mx - mn)                                                # scalar reciprocal
        sn = (o - mn) * inv
        return sn * jax.nn.sigmoid(alpha * (sn - beta))

    g_re = process_half(s_ref[0], y_ref[0])
    g_im = process_half(s_ref[1], y_ref[1])
    # torch.abs(torch.complex(real, imag)): plain elementwise combine (no sel matmul).
    out_ref[...] = jnp.sqrt(g_re * g_re + g_im * g_im)


def prepare_params(params):
    """One-time parameter preprocessing; re-run only when the weights change."""
    f32 = jnp.float32
    a_t = jnp.dot(params["phi1"].astype(f32), params["phi2"].astype(f32),
                  precision=jax.lax.Precision.HIGHEST).T              # (N, N) = (phi1@phi2)^T
    m = params["phi4"].T.astype(f32) * params["phi5"].astype(f32)     # M[k, j] = phi4[j,k]*phi5[k,j]
    phi3_t = params["phi3"].T.astype(f32)                             # (H, N)

    def pad2d(x, rows, cols):
        return jnp.pad(x, ((0, rows - x.shape[0]), (0, cols - x.shape[1])))

    # Pack the two (N, N) matrices into one buffer -> single DMA descriptor.
    w = jnp.stack([pad2d(a_t, N_PAD, N_PAD),
                   pad2d(m, N_PAD, N_PAD)]).astype(jnp.bfloat16)      # (2, N_PAD, N_PAD)
    phi3_t = pad2d(phi3_t, H, N_PAD).astype(jnp.bfloat16)             # (H, N_PAD)
    ab = jnp.concatenate([params["alpha"], params["beta"]]).astype(f32)   # (2,)
    return {"w": w, "phi3_t": phi3_t, "ab": ab}


@jax.jit
def deep_mpdr_forward(prepared, s_minus, bf_vector):
    """s_minus: (B, 2*181) f32;  bf_vector: (B, 2*64, 1) f32  ->  (B, 181) f32."""
    B = s_minus.shape[0]
    split_idx = s_minus.shape[1] // 2
    half = bf_vector.shape[1] // 2
    n_pad = prepared["w"].shape[-1]

    # Activation layout glue: real/imag halves on a leading axis, lanes zero-padded.
    s = jnp.stack([s_minus[:, :split_idx], s_minus[:, split_idx:]])        # (2, B, N)
    s = jnp.pad(s, ((0, 0), (0, 0), (0, n_pad - split_idx)))               # (2, B, N_PAD)
    y = bf_vector.reshape(B, bf_vector.shape[1])                            # squeeze (., 1)
    y = jnp.stack([y[:, :half], y[:, half:]])                               # (2, B, H)

    vmem = pl.BlockSpec(memory_space=pltpu.MemorySpace.VMEM)
    smem = pl.BlockSpec(memory_space=pltpu.MemorySpace.SMEM)
    out_padded = pl.pallas_call(
        functools.partial(_deep_mpdr_kernel, n_valid=split_idx),
        out_shape=jax.ShapeDtypeStruct((B, n_pad), jnp.float32),
        in_specs=[vmem, vmem, vmem, vmem, smem],
        out_specs=vmem,
    )(s, y, prepared["phi3_t"], prepared["w"], prepared["ab"])
    return out_padded[:, :split_idx]


if __name__ == "__main__":
    key = jax.random.PRNGKey(0)
    kp1, kp2, kp3, kp4, kp5, ka, kb, ks, ky = jax.random.split(key, 9)

    params = {
        "phi1": jax.random.normal(kp1, (N, H), jnp.float32),
        "phi2": jax.random.normal(kp2, (H, N), jnp.float32),
        "phi3": jax.random.normal(kp3, (N, H), jnp.float32),
        "phi4": jax.random.normal(kp4, (N, N), jnp.float32),
        "phi5": jax.random.normal(kp5, (N, N), jnp.float32),
        "alpha": jax.random.normal(ka, (1,), jnp.float32),
        "beta": jax.random.normal(kb, (1,), jnp.float32),
    }

    B = 2
    s_minus = jax.random.normal(ks, (B, 2 * N), jnp.float32)        # (2, 362)
    bf_vector = jax.random.normal(ky, (B, 2 * H, 1), jnp.float32)   # (2, 128, 1)

    prepared = prepare_params(params)   # cached across forward calls (re-run on weight update)
    out = deep_mpdr_forward(prepared, s_minus, bf_vector)
    out = jax.block_until_ready(out)
    assert out.shape == (B, N) and out.dtype == jnp.float32
    assert bool(jnp.all(jnp.isfinite(out)))
    print("KERNEL_OK")
</pallas_src>

<mosaic_0001>
module attributes {stable_mosaic.version = 11 : i64} {
  func.func @_deep_mpdr_kernel(%arg0: memref<2x2x256xf32, #tpu.memory_space<vmem>>, %arg1: memref<2x2x64xf32, #tpu.memory_space<vmem>>, %arg2: memref<64x256xbf16, #tpu.memory_space<vmem>>, %arg3: memref<2x256x256xbf16, #tpu.memory_space<vmem>>, %arg4: memref<2xf32, #tpu.memory_space<smem>>, %arg5: memref<2x256xf32, #tpu.memory_space<vmem>>) attributes {dimension_semantics = [], scalar_prefetch = 0 : i64, scratch_operands = 0 : i64, tpu.core_type = #tpu.core_type<tc>} {
    %c0 = arith.constant 0 : index
    %c0_0 = arith.constant 0 : index
    %0 = vector.load %arg2[%c0, %c0_0] : memref<64x256xbf16, #tpu.memory_space<vmem>>, vector<64x256xbf16>
    %c0_1 = arith.constant 0 : index
    %c0_2 = arith.constant 0 : index
    %c0_3 = arith.constant 0 : index
    %1 = vector.load %arg3[%c0_1, %c0_2, %c0_3] : memref<2x256x256xbf16, #tpu.memory_space<vmem>>, vector<1x256x256xbf16>
    %2 = vector.shape_cast %1 : vector<1x256x256xbf16> to vector<256x256xbf16>
    %c1 = arith.constant 1 : index
    %c0_4 = arith.constant 0 : index
    %c0_5 = arith.constant 0 : index
    %3 = vector.load %arg3[%c1, %c0_4, %c0_5] : memref<2x256x256xbf16, #tpu.memory_space<vmem>>, vector<1x256x256xbf16>
    %4 = vector.shape_cast %3 : vector<1x256x256xbf16> to vector<256x256xbf16>
    %c0_6 = arith.constant 0 : index
    %5 = memref.load %arg4[%c0_6] : memref<2xf32, #tpu.memory_space<smem>>
    %c1_7 = arith.constant 1 : index
    %6 = memref.load %arg4[%c1_7] : memref<2xf32, #tpu.memory_space<smem>>
    %7 = tpu.iota {dimensions = array<i32: 1>} : vector<2x256xi32>
    %c181_i32 = arith.constant 181 : i32
    %8 = vector.broadcast %c181_i32 : i32 to vector<2x256xi32>
    %9 = arith.cmpi slt, %7, %8 : vector<2x256xi32>
    %c0_8 = arith.constant 0 : index
    %c0_9 = arith.constant 0 : index
    %c0_10 = arith.constant 0 : index
    %10 = vector.load %arg0[%c0_8, %c0_9, %c0_10] : memref<2x2x256xf32, #tpu.memory_space<vmem>>, vector<1x2x256xf32>
    %11 = vector.shape_cast %10 : vector<1x2x256xf32> to vector<2x256xf32>
    %c0_11 = arith.constant 0 : index
    %c0_12 = arith.constant 0 : index
    %c0_13 = arith.constant 0 : index
    %12 = vector.load %arg1[%c0_11, %c0_12, %c0_13] : memref<2x2x64xf32, #tpu.memory_space<vmem>>, vector<1x2x64xf32>
    %13 = vector.shape_cast %12 : vector<1x2x64xf32> to vector<2x64xf32>
    %14 = arith.truncf %13 : vector<2x64xf32> to vector<2x64xbf16>
    %cst = arith.constant dense<0.000000e+00> : vector<2x256xf32>
    %15 = tpu.matmul %14, %0, %cst {dimension_numbers = #tpu.dot_dimension_numbers<[1], [0], [0], [1], [0, 0, 1, 1], [], []>} : vector<2x64xbf16>, vector<64x256xbf16>, vector<2x256xf32> -> vector<2x256xf32>
    %16 = arith.mulf %11, %15 : vector<2x256xf32>
    %17 = arith.truncf %16 : vector<2x256xf32> to vector<2x256xbf16>
    %cst_14 = arith.constant dense<0.000000e+00> : vector<2x256xf32>
    %18 = tpu.matmul %17, %2, %cst_14 {dimension_numbers = #tpu.dot_dimension_numbers<[1], [0], [0], [1], [0, 0, 1, 1], [], []>} : vector<2x256xbf16>, vector<256x256xbf16>, vector<2x256xf32> -> vector<2x256xf32>
    %19 = arith.truncf %11 : vector<2x256xf32> to vector<2x256xbf16>
    %cst_15 = arith.constant dense<0.000000e+00> : vector<2x256xf32>
    %20 = tpu.matmul %19, %4, %cst_15 {dimension_numbers = #tpu.dot_dimension_numbers<[1], [0], [0], [1], [0, 0, 1, 1], [], []>} : vector<2x256xbf16>, vector<256x256xbf16>, vector<2x256xf32> -> vector<2x256xf32>
    %21 = arith.mulf %18, %20 : vector<2x256xf32>
    %cst_16 = arith.constant 0x7F800000 : f32
    %22 = vector.broadcast %cst_16 : f32 to vector<2x256xf32>
    %23 = arith.select %9, %21, %22 : vector<2x256xi1>, vector<2x256xf32>
    %24 = vector.shape_cast %23 : vector<2x256xf32> to vector<1x2x256xf32>
    %cst_17 = arith.constant dense<0x7F800000> : vector<1xf32>
    %25 = vector.multi_reduction <minimumf>, %24, %cst_17 [1, 2] : vector<1x2x256xf32> to vector<1xf32>
    %26 = vector.shape_cast %25 : vector<1xf32> to vector<1x1x1xf32>
    %27 = vector.extract %26[0, 0, 0] : f32 from vector<1x1x1xf32>
    %28 = vector.broadcast %27 : f32 to vector<1x1xf32>
    %cst_18 = arith.constant 0xFF800000 : f32
    %29 = vector.broadcast %cst_18 : f32 to vector<2x256xf32>
    %30 = arith.select %9, %21, %29 : vector<2x256xi1>, vector<2x256xf32>
    %31 = vector.shape_cast %30 : vector<2x256xf32> to vector<1x2x256xf32>
    %cst_19 = arith.constant dense<0xFF800000> : vector<1xf32>
    %32 = vector.multi_reduction <maximumf>, %31, %cst_19 [1, 2] : vector<1x2x256xf32> to vector<1xf32>
    %33 = vector.shape_cast %32 : vector<1xf32> to vector<1x1x1xf32>
    %34 = vector.extract %33[0, 0, 0] : f32 from vector<1x1x1xf32>
    %35 = vector.broadcast %34 : f32 to vector<1x1xf32>
    %36 = arith.subf %35, %28 : vector<1x1xf32>
    %cst_20 = arith.constant 1.000000e+00 : f32
    %37 = vector.broadcast %cst_20 : f32 to vector<1x1xf32>
    %38 = arith.divf %37, %36 : vector<1x1xf32>
    %39 = vector.broadcast %28 : vector<1x1xf32> to vector<2x256xf32>
    %40 = arith.subf %21, %39 : vector<2x256xf32>
    %41 = vector.broadcast %38 : vector<1x1xf32> to vector<2x256xf32>
    %42 = arith.mulf %40, %41 : vector<2x256xf32>
    %43 = vector.broadcast %6 : f32 to vector<2x256xf32>
    %44 = arith.subf %42, %43 : vector<2x256xf32>
    %45 = vector.broadcast %5 : f32 to vector<2x256xf32>
    %46 = arith.mulf %45, %44 : vector<2x256xf32>
    %47 = arith.negf %46 : vector<2x256xf32>
    %48 = math.exp %47 : vector<2x256xf32>
    %cst_21 = arith.constant 1.000000e+00 : f32
    %49 = vector.broadcast %cst_21 : f32 to vector<2x256xf32>
    %50 = arith.addf %49, %48 : vector<2x256xf32>
    %51 = arith.divf %49, %50 : vector<2x256xf32>
    %52 = arith.mulf %42, %51 : vector<2x256xf32>
    %c1_22 = arith.constant 1 : index
    %c0_23 = arith.constant 0 : index
    %c0_24 = arith.constant 0 : index
    %53 = vector.load %arg0[%c1_22, %c0_23, %c0_24] : memref<2x2x256xf32, #tpu.memory_space<vmem>>, vector<1x2x256xf32>
    %54 = vector.shape_cast %53 : vector<1x2x256xf32> to vector<2x256xf32>
    %c1_25 = arith.constant 1 : index
    %c0_26 = arith.constant 0 : index
    %c0_27 = arith.constant 0 : index
    %55 = vector.load %arg1[%c1_25, %c0_26, %c0_27] : memref<2x2x64xf32, #tpu.memory_space<vmem>>, vector<1x2x64xf32>
    %56 = vector.shape_cast %55 : vector<1x2x64xf32> to vector<2x64xf32>
    %57 = arith.truncf %56 : vector<2x64xf32> to vector<2x64xbf16>
    %cst_28 = arith.constant dense<0.000000e+00> : vector<2x256xf32>
    %58 = tpu.matmul %57, %0, %cst_28 {dimension_numbers = #tpu.dot_dimension_numbers<[1], [0], [0], [1], [0, 0, 1, 1], [], []>} : vector<2x64xbf16>, vector<64x256xbf16>, vector<2x256xf32> -> vector<2x256xf32>
    %59 = arith.mulf %54, %58 : vector<2x256xf32>
    %60 = arith.truncf %59 : vector<2x256xf32> to vector<2x256xbf16>
    %cst_29 = arith.constant dense<0.000000e+00> : vector<2x256xf32>
    %61 = tpu.matmul %60, %2, %cst_29 {dimension_numbers = #tpu.dot_dimension_numbers<[1], [0], [0], [1], [0, 0, 1, 1], [], []>} : vector<2x256xbf16>, vector<256x256xbf16>, vector<2x256xf32> -> vector<2x256xf32>
    %62 = arith.truncf %54 : vector<2x256xf32> to vector<2x256xbf16>
    %cst_30 = arith.constant dense<0.000000e+00> : vector<2x256xf32>
    %63 = tpu.matmul %62, %4, %cst_30 {dimension_numbers = #tpu.dot_dimension_numbers<[1], [0], [0], [1], [0, 0, 1, 1], [], []>} : vector<2x256xbf16>, vector<256x256xbf16>, vector<2x256xf32> -> vector<2x256xf32>
    %64 = arith.mulf %61, %63 : vector<2x256xf32>
    %cst_31 = arith.constant 0x7F800000 : f32
    %65 = vector.broadcast %cst_31 : f32 to vector<2x256xf32>
    %66 = arith.select %9, %64, %65 : vector<2x256xi1>, vector<2x256xf32>
    %67 = vector.shape_cast %66 : vector<2x256xf32> to vector<1x2x256xf32>
    %cst_32 = arith.constant dense<0x7F800000> : vector<1xf32>
    %68 = vector.multi_reduction <minimumf>, %67, %cst_32 [1, 2] : vector<1x2x256xf32> to vector<1xf32>
    %69 = vector.shape_cast %68 : vector<1xf32> to vector<1x1x1xf32>
    %70 = vector.extract %69[0, 0, 0] : f32 from vector<1x1x1xf32>
    %71 = vector.broadcast %70 : f32 to vector<1x1xf32>
    %cst_33 = arith.constant 0xFF800000 : f32
    %72 = vector.broadcast %cst_33 : f32 to vector<2x256xf32>
    %73 = arith.select %9, %64, %72 : vector<2x256xi1>, vector<2x256xf32>
    %74 = vector.shape_cast %73 : vector<2x256xf32> to vector<1x2x256xf32>
    %cst_34 = arith.constant dense<0xFF800000> : vector<1xf32>
    %75 = vector.multi_reduction <maximumf>, %74, %cst_34 [1, 2] : vector<1x2x256xf32> to vector<1xf32>
    %76 = vector.shape_cast %75 : vector<1xf32> to vector<1x1x1xf32>
    %77 = vector.extract %76[0, 0, 0] : f32 from vector<1x1x1xf32>
    %78 = vector.broadcast %77 : f32 to vector<1x1xf32>
    %79 = arith.subf %78, %71 : vector<1x1xf32>
    %cst_35 = arith.constant 1.000000e+00 : f32
    %80 = vector.broadcast %cst_35 : f32 to vector<1x1xf32>
    %81 = arith.divf %80, %79 : vector<1x1xf32>
    %82 = vector.broadcast %71 : vector<1x1xf32> to vector<2x256xf32>
    %83 = arith.subf %64, %82 : vector<2x256xf32>
    %84 = vector.broadcast %81 : vector<1x1xf32> to vector<2x256xf32>
    %85 = arith.mulf %83, %84 : vector<2x256xf32>
    %86 = vector.broadcast %6 : f32 to vector<2x256xf32>
    %87 = arith.subf %85, %86 : vector<2x256xf32>
    %88 = vector.broadcast %5 : f32 to vector<2x256xf32>
    %89 = arith.mulf %88, %87 : vector<2x256xf32>
    %90 = arith.negf %89 : vector<2x256xf32>
    %91 = math.exp %90 : vector<2x256xf32>
    %cst_36 = arith.constant 1.000000e+00 : f32
    %92 = vector.broadcast %cst_36 : f32 to vector<2x256xf32>
    %93 = arith.addf %92, %91 : vector<2x256xf32>
    %94 = arith.divf %92, %93 : vector<2x256xf32>
    %95 = arith.mulf %85, %94 : vector<2x256xf32>
    %96 = arith.mulf %52, %52 : vector<2x256xf32>
    %97 = arith.mulf %95, %95 : vector<2x256xf32>
    %98 = arith.addf %96, %97 : vector<2x256xf32>
    %99 = math.sqrt %98 : vector<2x256xf32>
    %c0_37 = arith.constant 0 : index
    %c0_38 = arith.constant 0 : index
    %100 = vector.load %arg5[%c0_37, %c0_38] : memref<2x256xf32, #tpu.memory_space<vmem>>, vector<2x256xf32>
    tpu.vector_store %arg5[%c0_37, %c0_38], %99 {strides = array<i32>} : memref<2x256xf32, #tpu.memory_space<vmem>>, vector<2x256xf32>,
    return
  }
}

</mosaic_0001>

<bundles_post_ra>
// kernel: deep_mpdr_forward.1
= control target key start
LH: loop header
LB: loop body
LE: loop exit
PB: predicated region body
PF: predicated region fallthrough
CT: control target
= control target key end

     0   :  { %10 = vsyncpa [#allocation3], 0  ;;  %s1683_s0 = inlined_call_operand.vmem [shape: f32[2,2,256], index: 0, kind: input, shape index: {}]   ;;  %s1684_s1 = inlined_call_operand.vmem [shape: f32[2,2,64], index: 1, kind: input, shape index: {}]   ;;  %s1685_s2 = inlined_call_operand.hbm [shape: bf16[64,256], index: 2, kind: input, shape index: {}]   ;;  %s1686_s3 = inlined_call_operand.hbm [shape: bf16[2,256,256], index: 3, kind: input, shape index: {}]   ;;  %s1687_s4 = inlined_call_operand.vmem [shape: f32[2], index: 4, kind: input, shape index: {}]   ;;  %s1688_s5 = inlined_call_operand.hbm [shape: f32[2,256], index: 5, kind: output, shape index: {}]  }
   0x1   :  { %11 = vsyncpa [#allocation7], 0 }
   0x2   :  { %12 = vsyncpa [#allocation5], 0 }
   0x3   :  { %13 = vsyncpa [#allocation4], 0  ;;  %s1316_s18 = smov [#allocation2]  }
   0x4   :  { %s23_s19 = sshll.u32 %s1316_s18, 4  ;;  %s24_s19 = int_to_ptr.vmem [resolvable:$true] %s23_s19 }
   0x5   :  { %s1244_s20 = scalar_lea.vmem %s24_s19, 1024  ;;  %p1249_p1 = scmp.lt.s32.totalorder %s24_s19, %s24_s19 }
   0x6   :  { %p1245_p0 = scmp.ne.s32.totalorder %s24_s19, %s1244_s20  ;;  %p1250_p2 = scmp.lt.s32.totalorder %s1244_s20, %s1244_s20 }
   0x8   :  { %p1251_p3 = por %p1250_p2, %p1249_p1 }
   0xa   :  { %p1252_p4 = pnand %p1251_p3, %p1245_p0 }
   0xc   :  { %1255 = shalt.err (!%p1252_p4)
}
   0xd   :  { %s1317_s21 = smov 128   ;;  %s1318_s22 = smov 8  }
   0xe   :  { %29 = dma.hbm_to_vmem [thread:$0]  %s1685_s2, 1024, %s24_s19, [#allocation3], %s1317_s21, %s1317_s21, %s1318_s22  }
   0xf   :  { %s1319_s25 = smov [#allocation6]   ;;  %s48_s29 = sshll.u32 %s1687_s4, 4  ;;  %s49_s29 = int_to_ptr.vmem [resolvable:$true] %s48_s29 }
  0x10   :  { %s35_s26 = sshll.u32 %s1319_s25, 4  ;;  %s36_s26 = int_to_ptr.vmem [resolvable:$true] %s35_s26 }
  0x11   :  { %s1264_s30 = scalar_lea.vmem %s36_s26, 8192  ;;  %p1269_p6 = scmp.lt.s32.totalorder %s36_s26, %s36_s26 }
  0x12   :  { %p1265_p5 = scmp.ne.s32.totalorder %s36_s26, %s1264_s30  ;;  %p1270_p7 = scmp.lt.s32.totalorder %s1264_s30, %s1264_s30 }
  0x14   :  { %p1271_p8 = por %p1270_p7, %p1269_p6 }
  0x16   :  { %p1272_p9 = pnand %p1271_p8, %p1265_p5 }
  0x18   :  { %1275 = shalt.err (!%p1272_p9)
}
  0x19   :  { %41 = dma.hbm_to_vmem [thread:$0]  %s1686_s3, 8192, %s36_s26, [#allocation7], %s1317_s21, %s1317_s21, %s1318_s22  }
  0x1a   :  { %s1276_s2 = scalar_lea.vmem %s49_s29, 16  ;;  %p1281_p11 = scmp.lt.s32.totalorder %s49_s29, %s49_s29 }
  0x1b   :  { %p1277_p10 = scmp.ne.s32.totalorder %s49_s29, %s1276_s2  ;;  %p1282_p12 = scmp.lt.s32.totalorder %s1276_s2, %s1276_s2 }
  0x1d   :  { %p1283_p13 = por %p1282_p12, %p1281_p11 }
  0x1f   :  { %p1284_p0 = pnand %p1283_p13, %p1277_p10 }
  0x21   :  { %1287 = shalt.err (!%p1284_p0)
}
  0x22   :  { %s1320_s4 = smov [#allocation8]  }
  0x23   :  { %51 = dma.vmem_to_smem %s49_s29, 16, %s1320_s4, [#allocation5]  }
  0x24   :  { %1308 = dma.done.wait [#allocation3], 1024  }
  0x25   :  { %1309 = vsyncadd [#allocation3], 4294966272 }
  0x26   :  { %1310 = dma.done.wait [#allocation7], 8192  }
  0x27   :  { %1311 = vsyncadd [#allocation7], 4294959104 }
  0x28   :  { %1312 = dma.done.wait [#allocation5], 16  }
  0x29   :  { %1313 = vsyncadd [#allocation5], 4294967280 }
  0x2a   :  { %61 = sfence }
  0x2b   :  { %v1363_v0 = vld [vmem:[#allocation2 + $0x34] ss:$8 sps:$4 sm:$0xff]   ;;  %v1365_v1 = vld [vmem:[#allocation2 + $0x30] ss:$8 sps:$4 sm:$0xff]   ;;  %v1689_v2 = vmov 0   ;;  %vm186_vm0 = vcmask 523264   ;;  %v1699_v63 = vlaneseq }
  0x2c   :  { %222 = vmatprep.mubr.bf16.mxu0 %v1689_v2  ;;  %198 = vmatprep.subr.bf16.mxu0 %v1363_v0  ;;  %v1369_v3 = vld [vmem:[#allocation2 + $0x24] ss:$8 sps:$4 sm:$0xff]   ;;  %v1372_v4 = vld [vmem:[#allocation2 + $0x20] ss:$8 sps:$4 sm:$0xff]   ;;  %v1375_v5 = vld [vmem:[#allocation2 + $0x14] ss:$8 sps:$4 sm:$0xff]  }
  0x2d   :  { %199 = vmatpush1.bf16.msra.mxu0 %v1365_v1  ;;  %v1377_v6 = vld [vmem:[#allocation6 + $0x74] ss:$8 sps:$4 sm:$0xff]   ;;  %v1379_v7 = vld [vmem:[#allocation6 + $0x70] ss:$8 sps:$4 sm:$0xff]   ;;  %v1385_v9 = vld [vmem:[#allocation2 + $0x4] ss:$8 sps:$4 sm:$0xff]  }
  0x2e   :  { %200 = vmatprep.subr.bf16.mxu0 %v1369_v3  ;;  %v1382_v8 = vld [vmem:[#allocation2 + $0x10] ss:$8 sps:$4 sm:$0xff]   ;;  %416 = vmatprep.subr.bf16.mxu1 %v1377_v6  ;;  %v1389_v10 = vld [vmem:[#allocation6 + $0x64] ss:$8 sps:$4 sm:$0xff]   ;;  %v1391_v11 = vld [vmem:[#allocation6 + $0x60] ss:$8 sps:$4 sm:$0xff]  }
  0x2f   :  { %417 = vmatpush1.bf16.msra.mxu1 %v1379_v7  ;;  %v1393_v12 = vld [vmem:[#allocation2] ss:$8 sps:$4 sm:$0xff]   ;;  %v1400_v14 = vld [vmem:[#allocation6 + $0x54] ss:$8 sps:$4 sm:$0xff]   ;;  %v1406_v16 = vld [vmem:[#allocation6 + $0x50] ss:$8 sps:$4 sm:$0xff]  }
  0x30   :  { %v144_v13 = vld [vmem:[%s1684_s1] sm:$0x3]  ;;  %418 = vmatprep.subr.bf16.mxu1 %v1389_v10  ;;  %v1403_v15 = vld [vmem:[#allocation6 + $0x174] ss:$8 sps:$4 sm:$0xff]   ;;  %v1409_v18 = vld [vmem:[#allocation6 + $0x44] ss:$8 sps:$4 sm:$0xff]  }
  0x31   :  { %201 = vmatpush1.bf16.msra.mxu0 %v1372_v4  ;;  %v145_v17 = vpack.c.bf16 %v144_v13, %v144_v13  ;;  %v1412_v19 = vld [vmem:[#allocation6 + $0x170] ss:$8 sps:$4 sm:$0xff]   ;;  %v1415_v20 = vld [vmem:[#allocation6 + $0x164] ss:$8 sps:$4 sm:$0xff]   ;;  %v1418_v21 = vld [vmem:[#allocation6 + $0x40] ss:$8 sps:$4 sm:$0xff]  }
  0x32   :  { %202 = vmatprep.subr.bf16.mxu0 %v1375_v5  ;;  %v1422_v22 = vld [vmem:[#allocation6 + $0x34] ss:$8 sps:$4 sm:$0xff]   ;;  %v1425_v23 = vld [vmem:[#allocation6 + $0x160] ss:$8 sps:$4 sm:$0xff]   ;;  %v1431_v25 = vld [vmem:[#allocation6 + $0x30] ss:$8 sps:$4 sm:$0xff]  }
  0x33   :  { %419 = vmatpush1.bf16.msra.mxu1 %v1391_v11  ;;  %v1428_v24 = vld [vmem:[#allocation6 + $0x154] ss:$8 sps:$4 sm:$0xff]   ;;  %v1434_v26 = vld [vmem:[#allocation6 + $0x24] ss:$8 sps:$4 sm:$0xff]   ;;  %v1437_v27 = vld [vmem:[#allocation6 + $0x150] ss:$8 sps:$4 sm:$0xff]  }
  0x34   :  { %420 = vmatprep.subr.bf16.mxu1 %v1400_v14  ;;  %v1440_v28 = vld [vmem:[#allocation6 + $0x144] ss:$8 sps:$4 sm:$0xff]   ;;  %v1443_v29 = vld [vmem:[#allocation6 + $0x20] ss:$8 sps:$4 sm:$0xff]   ;;  %v1446_v30 = vld [vmem:[#allocation6 + $0x14] ss:$8 sps:$4 sm:$0xff]  }
  0x35   :  { %203 = vmatpush1.bf16.msra.mxu0 %v1382_v8  ;;  %v1449_v31 = vld [vmem:[#allocation6 + $0x140] ss:$8 sps:$4 sm:$0xff]   ;;  %v1452_v32 = vld [vmem:[#allocation6 + $0x134] ss:$8 sps:$4 sm:$0xff]   ;;  %v1455_v33 = vld [vmem:[#allocation6 + $0x10] ss:$8 sps:$4 sm:$0xff]  }
  0x36   :  { %204 = vmatprep.subr.bf16.mxu0 %v1385_v9  ;;  %v1458_v34 = vld [vmem:[#allocation6 + $0x4] ss:$8 sps:$4 sm:$0xff]   ;;  %v1461_v35 = vld [vmem:[#allocation6 + $0x130] ss:$8 sps:$4 sm:$0xff]   ;;  %v1467_v37 = vld [vmem:[#allocation6] ss:$8 sps:$4 sm:$0xff]  }
  0x37   :  { %421 = vmatpush1.bf16.msra.mxu1 %v1406_v16  ;;  %v1464_v36 = vld [vmem:[#allocation6 + $0x124] ss:$8 sps:$4 sm:$0xff]   ;;  %v1470_v38 = vld [vmem:[#allocation6 + $0xf4] ss:$8 sps:$4 sm:$0xff]   ;;  %v1473_v39 = vld [vmem:[#allocation6 + $0x120] ss:$8 sps:$4 sm:$0xff]  }
  0x38   :  { %422 = vmatprep.subr.bf16.mxu1 %v1409_v18  ;;  %v1476_v40 = vld [vmem:[#allocation6 + $0x114] ss:$8 sps:$4 sm:$0xff]   ;;  %v1478_v41 = vld [vmem:[#allocation6 + $0x110] ss:$8 sps:$4 sm:$0xff]   ;;  %v1483_v43 = vld [vmem:[#allocation6 + $0x104] ss:$8 sps:$4 sm:$0xff]  }
  0x39   :  { %205 = vmatpush1.bf16.msra.mxu0 %v1393_v12  ;;  %v1481_v42 = vld [vmem:[#allocation6 + $0xf0] ss:$8 sps:$4 sm:$0xff]   ;;  %v1486_v44 = vld [vmem:[#allocation6 + $0xe4] ss:$8 sps:$4 sm:$0xff]   ;;  %v1489_v45 = vld [vmem:[#allocation6 + $0xe0] ss:$8 sps:$4 sm:$0xff]  }
  0x3a   :  { %630 = vmatprep.subr.bf16.mxu0 %v1403_v15  ;;  %v1492_v46 = vld [vmem:[#allocation6 + $0xd4] ss:$8 sps:$4 sm:$0xff]   ;;  %v1497_v47 = vld [vmem:[#allocation6 + $0x100] ss:$8 sps:$4 sm:$0xff]   ;;  %v1503_v49 = vld [vmem:[#allocation6 + $0xd0] ss:$8 sps:$4 sm:$0xff]  }
  0x3b   :  { %423 = vmatpush1.bf16.msra.mxu1 %v1418_v21  ;;  %1705 = vst [vmem:[#allocation14_spill] sm:$0xff] %v1497_v47  ;;  %v1500_v48 = vld [vmem:[#allocation6 + $0x1f4] ss:$8 sps:$4 sm:$0xff]   ;;  %v1506_v50 = vld [vmem:[#allocation6 + $0xc4] ss:$8 sps:$4 sm:$0xff]   ;;  %vm675_vm2 = vcmask 1041408  }
  0x3c   :  { %1015 = vmatmul.mubr.msk.bf16.vlgmr.msra.gmra.mxu0 %vm186_vm0, %v145_v17  ;;  %424 = vmatprep.subr.bf16.mxu1 %v1422_v22  ;;  %1706 = vst [vmem:[#allocation15_spill] sm:$0xff] %v1500_v48  ;;  %v1509_v51 = vld [vmem:[#allocation6 + $0x1f0] ss:$8 sps:$4 sm:$0xff]   ;;  %v1512_v52 = vld [vmem:[#allocation6 + $0x1e4] ss:$8 sps:$4 sm:$0xff]   ;;  %s1006_s15 = sld [smem:[#allocation8 + $0x1]] }
  0x3d   :  { %631 = vmatpush1.bf16.msra.mxu0 %v1412_v19  ;;  %1707 = vst [vmem:[#allocation16_spill] sm:$0xff] %v1509_v51  ;;  %1708 = vst [vmem:[#allocation17_spill] sm:$0xff] %v1512_v52  ;;  %v1515_v53 = vld [vmem:[#allocation6 + $0xc0] ss:$8 sps:$4 sm:$0xff]   ;;  %v1518_v54 = vld [vmem:[#allocation6 + $0xb4] ss:$8 sps:$4 sm:$0xff]  }
  0x3e   :  { %632 = vmatprep.subr.bf16.mxu0 %v1415_v20  ;;  %v1521_v55 = vld [vmem:[#allocation6 + $0x1e0] ss:$8 sps:$4 sm:$0xff]   ;;  %v1524_v56 = vld [vmem:[#allocation6 + $0x1d4] ss:$8 sps:$4 sm:$0xff]   ;;  %v1529_v57 = vld [vmem:[#allocation6 + $0x1d0] ss:$8 sps:$4 sm:$0xff]  }
  0x3f   :  { %425 = vmatpush1.bf16.msra.mxu1 %v1431_v25  ;;  %1709 = vst [vmem:[#allocation18_spill] sm:$0xff] %v1521_v55  ;;  %1710 = vst [vmem:[#allocation19_spill] sm:$0xff] %v1524_v56  ;;  %v1532_v58 = vld [vmem:[#allocation6 + $0x1c4] ss:$8 sps:$4 sm:$0xff]   ;;  %v1535_v59 = vld [vmem:[#allocation6 + $0x1c0] ss:$8 sps:$4 sm:$0xff]  }
  0x40   :  { %426 = vmatprep.subr.bf16.mxu1 %v1434_v26  ;;  %1711 = vst [vmem:[#allocation20_spill] sm:$0xff] %v1529_v57  ;;  %1712 = vst [vmem:[#allocation21_spill] sm:$0xff] %v1532_v58  ;;  %v1539_v60 = vld [vmem:[#allocation6 + $0xb0] ss:$8 sps:$4 sm:$0xff]   ;;  %v1541_v61 = vld [vmem:[#allocation6 + $0x1b4] ss:$8 sps:$4 sm:$0xff]  }
  0x41   :  { %633 = vmatpush1.bf16.msra.mxu0 %v1425_v23  ;;  %1713 = vst [vmem:[#allocation22_spill] sm:$0xff] %v1535_v59  ;;  %1714 = vst [vmem:[#allocation23_spill] sm:$0xff] %v1541_v61  ;;  %v1543_v62 = vld [vmem:[#allocation6 + $0x1b0] ss:$8 sps:$4 sm:$0xff]   ;;  %v1322_v13 = vmov 1983009808  }
  0x42   :  { %634 = vmatprep.subr.bf16.mxu0 %v1428_v24  ;;  %1715 = vst [vmem:[#allocation24_spill] sm:$0xff] %v1543_v62  ;;  %v235_v17 = vunpack.c.l.s4 %v1322_v13  ;;  %v1194_v2 = vld [vmem:[#allocation6 + $0xa4] ss:$8 sps:$4 sm:$0xff]   ;;  %v1200_v13 = vld [vmem:[#allocation6 + $0x94] ss:$8 sps:$4 sm:$0xff]   ;;  %s136_s17 = sld [smem:[#allocation8]] }
  0x43   :  { %427 = vmatpush1.bf16.msra.mxu1 %v1443_v29  ;;  %s1323_s19 = smov [#allocation9]  }
  0x44   :  { %428 = vmatprep.subr.bf16.mxu1 %v1446_v30  ;;  %s995_s20 = sshll.u32 %s1323_s19, 4  ;;  %s996_s20 = int_to_ptr.vmem [resolvable:$true] %s995_s20 }
  0x45   :  { %635 = vmatpush1.bf16.msra.mxu0 %v1437_v27  ;;  %s1288_s21 = scalar_lea.vmem %s996_s20, 64  ;;  %p1293_p2 = scmp.lt.s32.totalorder %s996_s20, %s996_s20 }
  0x46   :  { %636 = vmatprep.subr.bf16.mxu0 %v1440_v28  ;;  %p1289_p1 = scmp.ne.s32.totalorder %s996_s20, %s1288_s21  ;;  %p1294_p3 = scmp.lt.s32.totalorder %s1288_s21, %s1288_s21 }
  0x47   :  { %429 = vmatpush1.bf16.msra.mxu1 %v1455_v33 }
  0x48   :  { %430 = vmatprep.subr.bf16.mxu1 %v1458_v34  ;;  %p1295_p4 = por %p1294_p3, %p1293_p2 }
  0x49   :  { %637 = vmatpush1.bf16.msra.mxu0 %v1449_v31 }
  0x4a   :  { %638 = vmatprep.subr.bf16.mxu0 %v1452_v32  ;;  %p1296_p5 = pnand %p1295_p4, %p1289_p1 }
  0x4b   :  { %431 = vmatpush1.bf16.msra.mxu1 %v1467_v37 }
  0x4c   :  { %432 = vmatprep.subr.bf16.mxu1 %v1470_v38 }
  0x4d   :  { %639 = vmatpush1.bf16.msra.mxu0 %v1461_v35 }
  0x4e   :  { %640 = vmatprep.subr.bf16.mxu0 %v1464_v36 }
  0x4f   :  { %433 = vmatpush2.bf16.msra.mxu1 %v1481_v42 }
  0x50   :  { %434 = vmatprep.subr.bf16.mxu1 %v1486_v44 }
  0x51   :  { %641 = vmatpush1.bf16.msra.mxu0 %v1473_v39 }
  0x52   :  { %642 = vmatprep.subr.bf16.mxu0 %v1476_v40 }
  0x53   :  { %435 = vmatpush2.bf16.msra.mxu1 %v1489_v45 }
  0x54   :  { %436 = vmatprep.subr.bf16.mxu1 %v1492_v46 }
  0x55   :  { %643 = vmatpush1.bf16.msra.mxu0 %v1478_v41 }
  0x56   :  { %644 = vmatprep.subr.bf16.mxu0 %v1483_v43 }
  0x57   :  { %437 = vmatpush2.bf16.msra.mxu1 %v1503_v49 }
  0x58   :  { %438 = vmatprep.subr.bf16.mxu1 %v1506_v50 }
  0x59   :  { %645 = vmatpush1.bf16.msra.mxu0 %v1497_v47 }
  0x5a   :  { %646 = vmatprep.subr.bf16.mxu0 %v1500_v48  ;;  %v1562_v48 = vld [vmem:[#allocation6 + $0x184] ss:$8 sps:$4 sm:$0xff]  }
  0x5b   :  { %439 = vmatpush2.bf16.msra.mxu1 %v1515_v53 }
  0x5c   :  { %440 = vmatprep.subr.bf16.mxu1 %v1518_v54 }
  0x5d   :  { %647 = vmatpush2.bf16.msra.mxu0 %v1509_v51 }
  0x5e   :  { %648 = vmatprep.subr.bf16.mxu0 %v1512_v52  ;;  %v1202_v52 = vld [vmem:[#allocation6 + $0x90] ss:$8 sps:$4 sm:$0xff]  }
  0x5f   :  { %441 = vmatpush2.bf16.msra.mxu1 %v1539_v60 }
  0x60   :  { %442 = vmatprep.subr.bf16.mxu1 %v1194_v2 }
  0x61   :  { %649 = vmatpush2.bf16.msra.mxu0 %v1521_v55  ;;  %v1551_v55 = vld [vmem:[#allocation6 + $0x1a0] ss:$8 sps:$4 sm:$0xff]  }
  0x62   :  { %650 = vmatprep.subr.bf16.mxu0 %v1524_v56  ;;  %v238_v56 = vshrl.u32 %v1699_v63, 7  ;;  %1717 = vst [vmem:[#allocation26_spill] sm:$0xff] %v1551_v55  ;;  %v1208_v63 = vld [vmem:[#allocation6 + $0x80] ss:$8 sps:$4 sm:$0xff]  }
  0x65   :  { %651 = vmatpush2.bf16.msra.mxu0 %v1529_v57  ;;  %v1196_v57 = vld [vmem:[#allocation6 + $0xa0] ss:$8 sps:$4 sm:$0xff]  }
  0x66   :  { %652 = vmatprep.subr.bf16.mxu0 %v1532_v58  ;;  %v1548_v58 = vld [vmem:[#allocation6 + $0x1a4] ss:$8 sps:$4 sm:$0xff]   ;;  %443 = vmatpush2.bf16.msra.mxu1 %v1196_v57 }
  0x67   :  { %1716 = vst [vmem:[#allocation25_spill] sm:$0xff] %v1548_v58  ;;  %444 = vmatprep.subr.bf16.mxu1 %v1200_v13 }
  0x69   :  { %653 = vmatpush2.bf16.msra.mxu0 %v1535_v59  ;;  %v236_v59 = vunpack.c.0.s8 %v235_v17  ;;  %v1206_v17 = vld [vmem:[#allocation6 + $0x84] ss:$8 sps:$4 sm:$0xff]  }
  0x6a   :  { %654 = vmatprep.subr.bf16.mxu0 %v1541_v61  ;;  %v1555_v61 = vld [vmem:[#allocation6 + $0x190] ss:$8 sps:$4 sm:$0xff]   ;;  %445 = vmatpush2.bf16.msra.mxu1 %v1202_v52 }
  0x6b   :  { %v1559_v51 = vsub.s32 %v236_v59, %v238_v56  ;;  %446 = vmatprep.subr.bf16.mxu1 %v1206_v17 }
  0x6d   :  { %655 = vmatpush2.bf16.msra.mxu0 %v1543_v62  ;;  %v1557_v62 = vld [vmem:[#allocation6 + $0x194] ss:$8 sps:$4 sm:$0xff]  }
  0x6e   :  { %656 = vmatprep.subr.bf16.mxu0 %v1548_v58  ;;  %1718 = vst [vmem:[#allocation27_spill] sm:$0xff] %v1557_v62  ;;  %v1568_v58 = vld [vmem:[#allocation6 + $0x180] ss:$8 sps:$4 sm:$0xff]   ;;  %447 = vmatpush2.bf16.msra.mxu1 %v1208_v63 }
  0x6f   :  { %747 = vmatprep.subr.bf16.mxu1 %v1363_v0 }
  0x71   :  { %657 = vmatpush2.bf16.msra.mxu0 %v1551_v55  ;;  %v143_v55 = vld [vmem:[%s1683_s0] sm:$0xf] }
  0x72   :  { %658 = vmatprep.subr.bf16.mxu0 %v1557_v62  ;;  %v464_v56 = vrot.slane %v143_v55, %v1559_v51 }
  0x74   :  { %v465_v59 = vcombine.high %v464_v56, %v464_v56  ;;  %v468_v47 = vpack.c.bf16 %v464_v56, %v464_v56 }
  0x75   :  { %659 = vmatpush2.bf16.msra.mxu0 %v1555_v61 }
  0x76   :  { %660 = vmatprep.subr.bf16.mxu0 %v1562_v48  ;;  %v469_v62 = vpack.c.bf16 %v465_v59, %v465_v59 }
  0x78   :  { %662 = vmatprep.mubr.bf16.mxu0 %v469_v62 }
  0x79   :  { %661 = vmatpush2.bf16.msra.mxu0 %v1568_v58 }
  0x7a   :  { %805 = vmatprep.subr.bf16.mxu0 %v1377_v6 }
  0x7c   :  { %663 = vmatmul.mubr.bf16.vlgmr.msra.gmra.mxu0 %v468_v47 }
  0x7d   :  { %806 = vmatpush1.bf16.msra.mxu0 %v1379_v7 }
  0x7e   :  { %807 = vmatprep.subr.bf16.mxu0 %v1389_v10 }
  0x81   :  { %808 = vmatpush1.bf16.msra.mxu0 %v1391_v11 }
  0x82   :  { %809 = vmatprep.subr.bf16.mxu0 %v1400_v14 }
  0x85   :  { %810 = vmatpush1.bf16.msra.mxu0 %v1406_v16 }
  0x86   :  { %811 = vmatprep.subr.bf16.mxu0 %v1409_v18 }
  0x89   :  { %812 = vmatpush1.bf16.msra.mxu0 %v1418_v21 }
  0x8a   :  { %813 = vmatprep.subr.bf16.mxu0 %v1422_v22 }
  0x8d   :  { %814 = vmatpush1.bf16.msra.mxu0 %v1431_v25 }
  0x8e   :  { %815 = vmatprep.subr.bf16.mxu0 %v1434_v26  ;;  %v1083_v26 = vld [vmem:[%s1684_s1 + $0x2] sm:$0x3] }
  0x91   :  { %816 = vmatpush1.bf16.msra.mxu0 %v1443_v29  ;;  %v735_v29 = vpack.c.bf16 %v1083_v26, %v1083_v26 }
  0x92   :  { %817 = vmatprep.subr.bf16.mxu0 %v1446_v30 }
  0x95   :  { %818 = vmatpush1.bf16.msra.mxu0 %v1455_v33 }
  0x96   :  { %819 = vmatprep.subr.bf16.mxu0 %v1458_v34  ;;  %v1082_v34 = vld [vmem:[%s1683_s0 + $0x4] sm:$0xf] }
  0x99   :  { %820 = vmatpush1.bf16.msra.mxu0 %v1467_v37 }
  0x9a   :  { %821 = vmatprep.subr.bf16.mxu0 %v1470_v38 }
  0x9d   :  { %822 = vmatpush2.bf16.msra.mxu0 %v1481_v42 }
  0x9e   :  { %823 = vmatprep.subr.bf16.mxu0 %v1486_v44 }
  0xa1   :  { %824 = vmatpush2.bf16.msra.mxu0 %v1489_v45 }
  0xa2   :  { %825 = vmatprep.subr.bf16.mxu0 %v1492_v46 }
  0xa5   :  { %826 = vmatpush2.bf16.msra.mxu0 %v1503_v49 }
  0xa6   :  { %827 = vmatprep.subr.bf16.mxu0 %v1506_v50 }
  0xa9   :  { %828 = vmatpush2.bf16.msra.mxu0 %v1515_v53 }
  0xaa   :  { %829 = vmatprep.subr.bf16.mxu0 %v1518_v54 }
  0xad   :  { %830 = vmatpush2.bf16.msra.mxu0 %v1539_v60 }
  0xae   :  { %831 = vmatprep.subr.bf16.mxu0 %v1194_v2  ;;  %v1719_v2 = vmov 0  }
  0xb1   :  { %832 = vmatpush2.bf16.msra.mxu0 %v1196_v57 }
  0xb2   :  { %833 = vmatprep.subr.bf16.mxu0 %v1200_v13 }
  0xb5   :  { %834 = vmatpush2.bf16.msra.mxu0 %v1202_v52 }
  0xb6   :  { %835 = vmatprep.subr.bf16.mxu0 %v1206_v17 }
  0xb9   :  { %836 = vmatpush2.bf16.msra.mxu0 %v1208_v63 }
  0xfc   :  { %v224_v0 = vpop.f32.mrf.mxu0 }
  0xfe   :  { %v226_v6 = vpop.f32.mrf.mxu0 }
  0xff   :  { %v233_v7 = vcombine.low %v224_v0, %v226_v6 }
 0x100   :  { %v228_v10 = vpop.f32.mrf.mxu0 }
 0x101   :  { %v240_v11 = vrot.slane %v233_v7, %v1559_v51 }
 0x102   :  { %v229_v14 = vpop.f32.mrf.mxu0 }
 0x103   :  { %v242_v16 = vmul.f32 %v240_v11, %v143_v55 }
 0x105   :  { %v250_v18 = vrot.slane %v242_v16, %v1559_v51 }
 0x107   :  { %v251_v21 = vcombine.high %v250_v18, %v250_v18  ;;  %v254_v25 = vpack.c.bf16 %v250_v18, %v250_v18 }
 0x109   :  { %v255_v22 = vpack.c.bf16 %v251_v21, %v251_v21 }
 0x10b   :  { %448 = vmatprep.mubr.bf16.mxu1 %v255_v22 }
 0x10c   :  { %449 = vmatmul.mubr.bf16.vlgmr.msra.gmra.mxu1 %v254_v25 }
 0x10d   :  { %748 = vmatpush1.bf16.msra.mxu1 %v1365_v1  ;;  %771 = vmatprep.mubr.bf16.mxu1 %v1719_v2  ;;  %v1720_v1 = vld [vmem:[#allocation14_spill] sm:$0xff] }
 0x10e   :  { %749 = vmatprep.subr.bf16.mxu1 %v1369_v3  ;;  %v1721_v3 = vld [vmem:[#allocation15_spill] sm:$0xff] }
 0x111   :  { %750 = vmatpush1.bf16.msra.mxu1 %v1372_v4  ;;  %v1722_v4 = vld [vmem:[#allocation16_spill] sm:$0xff] }
 0x112   :  { %751 = vmatprep.subr.bf16.mxu1 %v1375_v5  ;;  %v1723_v5 = vld [vmem:[#allocation17_spill] sm:$0xff] }
 0x115   :  { %752 = vmatpush1.bf16.msra.mxu1 %v1382_v8  ;;  %v1724_v8 = vld [vmem:[#allocation18_spill] sm:$0xff] }
 0x116   :  { %753 = vmatprep.subr.bf16.mxu1 %v1385_v9  ;;  %v1725_v9 = vld [vmem:[#allocation19_spill] sm:$0xff] }
 0x119   :  { %754 = vmatpush1.bf16.msra.mxu1 %v1393_v12  ;;  %v1726_v12 = vld [vmem:[#allocation20_spill] sm:$0xff] }
 0x11a   :  { %859 = vmatprep.subr.bf16.mxu1 %v1403_v15  ;;  %v1727_v15 = vld [vmem:[#allocation21_spill] sm:$0xff] }
 0x11c   :  { %1084 = vmatmul.mubr.msk.bf16.vlgmr.msra.gmra.mxu1 %vm186_vm0, %v735_v29 }
 0x11d   :  { %860 = vmatpush1.bf16.msra.mxu1 %v1412_v19  ;;  %v1728_v19 = vld [vmem:[#allocation22_spill] sm:$0xff] }
 0x11e   :  { %861 = vmatprep.subr.bf16.mxu1 %v1415_v20  ;;  %v1729_v20 = vld [vmem:[#allocation23_spill] sm:$0xff] }
 0x121   :  { %862 = vmatpush1.bf16.msra.mxu1 %v1425_v23 }
 0x122   :  { %863 = vmatprep.subr.bf16.mxu1 %v1428_v24  ;;  %v1730_v24 = vld [vmem:[#allocation24_spill] sm:$0xff] }
 0x125   :  { %864 = vmatpush1.bf16.msra.mxu1 %v1437_v27 }
 0x126   :  { %865 = vmatprep.subr.bf16.mxu1 %v1440_v28  ;;  %v1731_v28 = vld [vmem:[#allocation25_spill] sm:$0xff] }
 0x129   :  { %866 = vmatpush1.bf16.msra.mxu1 %v1449_v31  ;;  %v1732_v31 = vld [vmem:[#allocation26_spill] sm:$0xff] }
 0x12a   :  { %867 = vmatprep.subr.bf16.mxu1 %v1452_v32  ;;  %v1733_v32 = vld [vmem:[#allocation27_spill] sm:$0xff] }
 0x12d   :  { %868 = vmatpush1.bf16.msra.mxu1 %v1461_v35  ;;  %v853_v35 = vrot.slane %v1082_v34, %v1559_v51 }
 0x12e   :  { %869 = vmatprep.subr.bf16.mxu1 %v1464_v36 }
 0x12f   :  { %v854_v36 = vcombine.high %v853_v35, %v853_v35  ;;  %v857_v38 = vpack.c.bf16 %v853_v35, %v853_v35 }
 0x131   :  { %870 = vmatpush1.bf16.msra.mxu1 %v1473_v39  ;;  %v858_v37 = vpack.c.bf16 %v854_v36, %v854_v36  ;;  %v1734_v39 = vlaneseq }
 0x132   :  { %871 = vmatprep.subr.bf16.mxu1 %v1476_v40 }
 0x133   :  { %891 = vmatprep.mubr.bf16.mxu1 %v858_v37  ;;  %v139_v40 = vand.u32 127, %v1734_v39 }
 0x135   :  { %872 = vmatpush1.bf16.msra.mxu1 %v1478_v41  ;;  %v140_v41 = vadd.s32 128, %v139_v40 }
 0x136   :  { %873 = vmatprep.subr.bf16.mxu1 %v1483_v43 }
 0x137   :  { %vm142_vm1 = vcmp.lt.s32.totalorder %v140_v41, 181 }
 0x139   :  { %874 = vmatpush1.bf16.msra.mxu1 %v1720_v1 }
 0x13a   :  { %875 = vmatprep.subr.bf16.mxu1 %v1721_v3 }
 0x13c   :  { %v664_v23 = vpop.f32.mrf.mxu0 }
 0x13d   :  { %876 = vmatpush2.bf16.msra.mxu1 %v1722_v4 }
 0x13e   :  { %877 = vmatprep.subr.bf16.mxu1 %v1723_v5  ;;  %v666_v27 = vpop.f32.mrf.mxu0 }
 0x140   :  { %v668_v30 = vpop.f32.mrf.mxu0 }
 0x141   :  { %878 = vmatpush2.bf16.msra.mxu1 %v1724_v8 }
 0x142   :  { %879 = vmatprep.subr.bf16.mxu1 %v1725_v9  ;;  %v669_v33 = vpop.f32.mrf.mxu0 }
 0x145   :  { %880 = vmatpush2.bf16.msra.mxu1 %v1726_v12 }
 0x146   :  { %881 = vmatprep.subr.bf16.mxu1 %v1727_v15 }
 0x149   :  { %882 = vmatpush2.bf16.msra.mxu1 %v1728_v19 }
 0x14a   :  { %883 = vmatprep.subr.bf16.mxu1 %v1729_v20 }
 0x14d   :  { %884 = vmatpush2.bf16.msra.mxu1 %v1730_v24 }
 0x14e   :  { %885 = vmatprep.subr.bf16.mxu1 %v1731_v28 }
 0x151   :  { %886 = vmatpush2.bf16.msra.mxu1 %v1732_v31 }
 0x152   :  { %887 = vmatprep.subr.bf16.mxu1 %v1733_v32 }
 0x155   :  { %888 = vmatpush2.bf16.msra.mxu1 %v1555_v61 }
 0x156   :  { %889 = vmatprep.subr.bf16.mxu1 %v1562_v48 }
 0x159   :  { %890 = vmatpush2.bf16.msra.mxu1 %v1568_v58 }
 0x15c   :  { %892 = vmatmul.mubr.bf16.vlgmr.msra.gmra.mxu1 %v857_v38 }
 0x1cc   :  { %v450_v42 = vpop.f32.mrf.mxu1 }
 0x1cd   :  { %v1651_v43 = vmul.f32 %v664_v23, %v450_v42 }
 0x1ce   :  { %v452_v44 = vpop.f32.mrf.mxu1 }
 0x1cf   :  { %v1653_v45 = vmul.f32 %v666_v27, %v452_v44  ;;  %v676_v50 = vsel %vm675_vm2, %v1651_v43, inf  ;;  %v691_v55 = vsel %vm675_vm2, %v1651_v43, -inf }
 0x1d0   :  { %v454_v46 = vpop.f32.mrf.mxu1 }
 0x1d1   :  { %v674_v47 = vsel %vm142_vm1, %v1653_v45, inf  ;;  %v690_v48 = vsel %vm142_vm1, %v1653_v45, -inf }
 0x1d2   :  { %v455_v49 = vpop.f32.mrf.mxu1  ;;  %v677_v52 = vsel %vm675_vm2, %v674_v47, inf  ;;  %v692_v54 = vsel %vm675_vm2, %v690_v48, -inf }
 0x1d3   :  { %v678_v53 = vmin.f32 %v676_v50, %v677_v52  ;;  %v693_v57 = vmax.f32 %v691_v55, %v692_v54 }
 0x1d5   :  { %679 = vmin.xlane.f32.xlu0 %v678_v53 }
 0x1d9   :  { %694 = vmax.xlane.f32.xlu0 %v693_v57 }
 0x1dc   :  { %v773_v58 = vpop.f32.mrf.mxu1 }
 0x1de   :  { %v775_v60 = vpop.f32.mrf.mxu1 }
 0x1df   :  { %v782_v61 = vcombine.low %v773_v58, %v775_v60 }
 0x1e0   :  { %v777_v62 = vpop.f32.mrf.mxu1 }
 0x1e1   :  { %v789_v63 = vrot.slane %v782_v61, %v1559_v51 }
 0x1e2   :  { %v778_v13 = vpop.f32.mrf.mxu1 }
 0x1e3   :  { %v791_v17 = vmul.f32 %v1082_v34, %v789_v63 }
 0x1e5   :  { %v799_v56 = vrot.slane %v791_v17, %v1559_v51  ;;  %v711_v17 = vstv %s1006_s15 }
 0x1e7   :  { %v800_v59 = vcombine.high %v799_v56, %v799_v56  ;;  %v803_v6 = vpack.c.bf16 %v799_v56, %v799_v56 }
 0x1e9   :  { %v804_v0 = vpack.c.bf16 %v800_v59, %v800_v59 }
 0x1eb   :  { %837 = vmatprep.mubr.bf16.mxu0 %v804_v0  ;;  %v714_v0 = vstv %s136_s17 }
 0x1ec   :  { %838 = vmatmul.mubr.bf16.vlgmr.msra.gmra.mxu0 %v803_v6 }
 0x21c   :  { %v893_v7 = vpop.f32.mrf.mxu1 }
 0x21e   :  { %v895_v10 = vpop.f32.mrf.mxu1 }
 0x220   :  { %v897_v11 = vpop.f32.mrf.mxu1 }
 0x222   :  { %v898_v14 = vpop.f32.mrf.mxu1 }
 0x25e   :  { %v680_v16 = vpop.xlane.xlu0 %679 }
 0x25f   :  { %v681_v18 = vrot.slane %v680_v16, 4 }
 0x261   :  { %v682_v21 = vmin.f32 %v680_v16, %v681_v18 }
 0x262   :  { %v695_v22 = vpop.xlane.xlu0 %694 }
 0x263   :  { %v683_v25 = vrot.slane %v682_v21, 2  ;;  %v696_v2 = vrot.slane %v695_v22, 4 }
 0x265   :  { %v697_v26 = vmax.f32 %v695_v22, %v696_v2  ;;  %v684_v29 = vmin.f32 %v682_v21, %v683_v25 }
 0x267   :  { %v698_v1 = vrot.slane %v697_v26, 2  ;;  %v685_v3 = vrot.slane %v684_v29, 1 }
 0x269   :  { %v699_v51 = vmax.f32 %v697_v26, %v698_v1  ;;  %v686_v4 = vmin.f32 %v684_v29, %v685_v3 }
 0x26b   :  { %1088 = vpush %v686_v4  ;;  %v700_v5 = vrot.slane %v699_v51, 1 }
 0x26d   :  { %v701_v8 = vmax.f32 %v699_v51, %v700_v5 }
 0x26f   :  { %1090 = vpush %v701_v8 }
 0x29c   :  { %s1089_s0 = spop %1088 }
 0x29d   :  { %v688_v53 = vstv %s1089_s0 }
 0x29e   :  { %v707_v57 = vsub.f32 %v1651_v43, %v688_v53  ;;  %v708_v58 = vsub.f32 %v1653_v45, %v688_v53 }
 0x2a0   :  { %s1091_s14 = spop %1090 }
 0x2a1   :  { %v703_v52 = vstv %s1091_s14 }
 0x2a2   :  { %v704_v54 = vsub.f32 %v703_v52, %v688_v53 }
 0x2a4   :  { %1212 = vrcp.f32 %v704_v54 }
 0x2ac   :  { %v839_v9 = vpop.f32.mrf.mxu0 }
 0x2ad   :  { %v1667_v12 = vmul.f32 %v893_v7, %v839_v9 }
 0x2ae   :  { %v841_v15 = vpop.f32.mrf.mxu0 }
 0x2af   :  { %v901_v19 = vmul.f32 %v895_v10, %v841_v15  ;;  %v904_v28 = vsel %vm675_vm2, %v1667_v12, inf  ;;  %v919_v33 = vsel %vm675_vm2, %v1667_v12, -inf }
 0x2b0   :  { %v843_v20 = vpop.f32.mrf.mxu0 }
 0x2b1   :  { %v903_v23 = vsel %vm142_vm1, %v901_v19, inf  ;;  %v918_v24 = vsel %vm142_vm1, %v901_v19, -inf  ;;  %v1213_v55 = vpop.eup %1212 }
 0x2b2   :  { %v844_v27 = vpop.f32.mrf.mxu0  ;;  %v905_v30 = vsel %vm675_vm2, %v903_v23, inf  ;;  %v920_v32 = vsel %vm675_vm2, %v918_v24, -inf  ;;  %v709_v62 = vmul.f32 %v1213_v55, %v707_v57  ;;  %v710_v13 = vmul.f32 %v1213_v55, %v708_v58 }
 0x2b3   :  { %v906_v31 = vmin.f32 %v904_v28, %v905_v30  ;;  %v921_v34 = vmax.f32 %v919_v33, %v920_v32 }
 0x2b4   :  { %v712_v56 = vsub.f32 %v709_v62, %v711_v17  ;;  %v713_v59 = vsub.f32 %v710_v13, %v711_v17 }
 0x2b5   :  { %907 = vmin.xlane.f32.xlu1 %v906_v31 }
 0x2b6   :  { %v715_v6 = vmul.f32 %v714_v0, %v712_v56  ;;  %v716_v7 = vmul.f32 %v714_v0, %v713_v59 }
 0x2b8   :  { %v1080_v10 = vmul.f32 -1.442695, %v715_v6  ;;  %v1081_v11 = vmul.f32 -1.442695, %v716_v7 }
 0x2b9   :  { %922 = vmax.xlane.f32.xlu1 %v921_v34 }
 0x33e   :  { %v908_v35 = vpop.xlane.xlu1 %907 }
 0x33f   :  { %v909_v36 = vrot.slane %v908_v35, 4 }
 0x341   :  { %v910_v37 = vmin.f32 %v908_v35, %v909_v36 }
 0x342   :  { %v923_v38 = vpop.xlane.xlu1 %922 }
 0x343   :  { %v911_v39 = vrot.slane %v910_v37, 2  ;;  %v924_v40 = vrot.slane %v923_v38, 4 }
 0x345   :  { %v925_v41 = vmax.f32 %v923_v38, %v924_v40  ;;  %v912_v42 = vmin.f32 %v910_v37, %v911_v39 }
 0x347   :  { %v926_v44 = vrot.slane %v925_v41, 2  ;;  %v913_v46 = vrot.slane %v912_v42, 1 }
 0x349   :  { %v927_v47 = vmax.f32 %v925_v41, %v926_v44  ;;  %v914_v48 = vmin.f32 %v912_v42, %v913_v46 }
 0x34b   :  { %1092 = vpush %v914_v48  ;;  %v928_v49 = vrot.slane %v927_v47, 1 }
 0x34d   :  { %v929_v50 = vmax.f32 %v927_v47, %v928_v49 }
 0x34f   :  { %1094 = vpush %v929_v50 }
 0x37c   :  { %s1093_s16 = spop %1092 }
 0x37d   :  { %v916_v60 = vstv %s1093_s16 }
 0x37e   :  { %v935_v14 = vsub.f32 %v1667_v12, %v916_v60  ;;  %v936_v43 = vsub.f32 %v901_v19, %v916_v60 }
 0x380   :  { %s1095_s18 = spop %1094 }
 0x381   :  { %v931_v61 = vstv %s1095_s18 }
 0x382   :  { %v932_v63 = vsub.f32 %v931_v61, %v916_v60 }
 0x384   :  { %1214 = vrcp.f32 %v932_v63 }
 0x385   :  { %1216 = vpow2.f32 %v1080_v10 }
 0x386   :  { %1218 = vpow2.f32 %v1081_v11 }
 0x391   :  { %v1215_v16 = vpop.eup %1214 }
 0x392   :  { %v937_v45 = vmul.f32 %v1215_v16, %v935_v14  ;;  %v938_v18 = vmul.f32 %v1215_v16, %v936_v43  ;;  %v1217_v1 = vpop.eup %1216 }
 0x393   :  { %v1219_v3 = vpop.eup %1218  ;;  %v723_v51 = vadd.f32 1.0, %v1217_v1 }
 0x394   :  { %v939_v21 = vsub.f32 %v937_v45, %v711_v17  ;;  %v940_v22 = vsub.f32 %v938_v18, %v711_v17  ;;  %v724_v4 = vadd.f32 1.0, %v1219_v3 }
 0x396   :  { %v941_v25 = vmul.f32 %v939_v21, %v714_v0  ;;  %v942_v2 = vmul.f32 %v940_v22, %v714_v0 }
 0x398   :  { %v1085_v26 = vmul.f32 -1.442695, %v941_v25  ;;  %v1086_v29 = vmul.f32 -1.442695, %v942_v2 }
 0x39a   :  { %1220 = vpow2.f32 %v1085_v26 }
 0x39b   :  { %1222 = vpow2.f32 %v1086_v29 }
 0x39c   :  { %1224 = vrcp.f32 %v723_v51 }
 0x39d   :  { %1226 = vrcp.f32 %v724_v4 }
 0x3a7   :  { %v1221_v5 = vpop.eup %1220 }
 0x3a8   :  { %v1223_v8 = vpop.eup %1222  ;;  %v949_v9 = vadd.f32 1.0, %v1221_v5 }
 0x3a9   :  { %v950_v12 = vadd.f32 1.0, %v1223_v8  ;;  %v1225_v15 = vpop.eup %1224 }
 0x3aa   :  { %1228 = vrcp.f32 %v949_v9  ;;  %v1227_v19 = vpop.eup %1226  ;;  %v729_v20 = vmul.f32 %v1225_v15, %v709_v62 }
 0x3ab   :  { %1230 = vrcp.f32 %v950_v12  ;;  %v730_v24 = vmul.f32 %v1227_v19, %v710_v13 }
 0x3ac   :  { %v957_v31 = vmul.f32 %v729_v20, %v729_v20 }
 0x3ad   :  { %v958_v33 = vmul.f32 %v730_v24, %v730_v24 }
 0x3b7   :  { %v1229_v23 = vpop.eup %1228 }
 0x3b8   :  { %v1231_v27 = vpop.eup %1230  ;;  %v955_v28 = vmul.f32 %v1229_v23, %v937_v45 }
 0x3b9   :  { %v956_v30 = vmul.f32 %v1231_v27, %v938_v18 }
 0x3ba   :  { %v959_v32 = vmul.f32 %v955_v28, %v955_v28 }
 0x3bb   :  { %v960_v34 = vmul.f32 %v956_v30, %v956_v30 }
 0x3bc   :  { %v961_v35 = vadd.f32 %v959_v32, %v957_v31 }
 0x3bd   :  { %v962_v36 = vadd.f32 %v960_v34, %v958_v33 }
 0x3be   :  { %1232 = vrsqrt.f32 %v961_v35  ;;  %vm965_vm3 = vcmp.eq.f32.partialorder %v961_v35, inf  ;;  %v968_v40 = vand.u32 2147483648, %v961_v35  ;;  %vm967_vm4 = vcmp.eq.f32.partialorder %v961_v35, 0.0 }
 0x3bf   :  { %1234 = vrsqrt.f32 %v962_v36  ;;  %vm972_vm5 = vcmp.eq.f32.partialorder %v962_v36, inf  ;;  %v975_v44 = vand.u32 2147483648, %v962_v36  ;;  %vm974_vm6 = vcmp.eq.f32.partialorder %v962_v36, 0.0 }
 0x3cb   :  { %v1233_v37 = vpop.eup %1232 }
 0x3cc   :  { %v1235_v38 = vpop.eup %1234  ;;  %v964_v39 = vmul.f32 %v1233_v37, %v961_v35 }
 0x3cd   :  { %v971_v41 = vmul.f32 %v1235_v38, %v962_v36 }
 0x3ce   :  { %v966_v42 = vsel %vm965_vm3, %v961_v35, %v964_v39 }
 0x3cf   :  { %v969_v46 = vsel %vm967_vm4, %v968_v40, %v966_v42  ;;  %v973_v47 = vsel %vm972_vm5, %v962_v36, %v971_v41 }
 0x3d0   :  { %v976_v48 = vsel %vm974_vm6, %v975_v44, %v973_v47 }
 0x3d1   :  { %v979_v49 = vcombine.low %v969_v46, %v976_v48 }
 0x3d3   :  { %1087 = vst.sshfl [vmem:[#allocation9] sm:$0x33 pattern:$0x76325410] %v979_v49 }
 0x3d4   :  { %1299 = shalt.err (!%p1296_p5)
}
 0x3d5   :  { %998 = dma.vmem_to_hbm [thread:$0]  %s996_s20, 64, %s1688_s5, [#allocation4]  }
 0x3d6   :  { %1314 = dma.done.wait [#allocation4], 64  }
 0x3d7   :  { %1315 = vsyncadd [#allocation4], 4294967232 }
 0x3d8   :  { %1002 = vsyncpa [#allocation3], 1 }
 0x3d9   :  { %1003 = vsyncpa [#allocation7], 1 }
 0x3da   :  { %1004 = vsyncpa [#allocation4], 1 }
 0x3db   :  { %1005 = vsyncpa [#allocation5], 1 }

</bundles_post_ra>
